<compile_context>
chip_gen: v7x
topology: tpu7x:2x2x1
jax: 0.10.0
libtpu: 0.0.40
codegen_flags: <defaults>
</compile_context>

<pallas_src>
import functools

import jax
import jax.numpy as jnp
from jax import lax
from jax.experimental import pallas as pl
from jax.experimental.pallas import tpu as pltpu


# ---------------------------------------------------------------------------
# helpers
# ---------------------------------------------------------------------------
def _round_up(x, m):
    return ((x + m - 1) // m) * m


def _pick_pairwise_tile(n_pad, d_pad, budget=20 << 20):
    """Largest 128-multiple tile dividing n_pad whose double-buffered working set fits budget."""
    for t in (512, 256, 128):
        need = 8 * (2 * t * d_pad + 2 * t + t * t)   # 2 buffers x f32 x (2 inputs + 2 norms + out)
        if n_pad % t == 0 and need <= budget:
            return t
    return 128


def _pick_center_tile(d_pad, b, c, budget=20 << 20):
    for t in (512, 256, 128):
        need = 8 * (b * c + b * t + c + c * t)
        if d_pad % t == 0 and need <= budget:
            return t
    return 128


# ---------------------------------------------------------------------------
# Pallas kernels
# ---------------------------------------------------------------------------
def _pairwise_dist_kernel(xr_ref, xc_ref, nr_ref, nc_ref, o_ref):
    """dist_ij = sqrt(clamp(||xi||^2 + ||xj||^2 - 2 xi.xj, 1e-12))  (matches torch addmm_ path)."""
    xr = xr_ref[...]                                    # (tm, d)
    xc = xc_ref[...]                                    # (tn, d)
    # Contract on the feature axis of both operands: MXU consumes the "transposed" operand
    # directly (no XLU transpose / no materialized x.T).
    gram = lax.dot_general(xr, xc, (((1,), (1,)), ((), ())),
                           preferred_element_type=jnp.float32)   # (tm, tn)
    d2 = nr_ref[...] + nc_ref[...] - 2.0 * gram          # (tm,1)+(1,tn) broadcast
    o_ref[...] = jnp.sqrt(jnp.maximum(d2, 1e-12))


def pairwise_distance(features):
    """features: (n, d) -> (n, n) float32 pairwise distance matrix (Pallas, tiled)."""
    features = features.astype(jnp.float32)
    n, d = features.shape
    n_pad = _round_up(max(n, 1), 128)
    d_pad = _round_up(max(d, 1), 128)
    tile = _pick_pairwise_tile(n_pad, d_pad)

    x = jnp.pad(features, ((0, n_pad - n), (0, d_pad - d)))
    norms = jnp.sum(x * x, axis=1)                       # (n_pad,)  hoisted out of the kernel

    vmem_need = 8 * (2 * tile * d_pad + 2 * tile + tile * tile)
    vmem_limit = int(min(max(2 * vmem_need, 16 << 20), 48 << 20))

    grid = (n_pad // tile, n_pad // tile)
    dist_pad = pl.pallas_call(
        _pairwise_dist_kernel,
        out_shape=jax.ShapeDtypeStruct((n_pad, n_pad), jnp.float32),
        grid=grid,
        in_specs=[
            pl.BlockSpec((tile, d_pad), lambda i, j: (i, 0)),   # row tile of x
            pl.BlockSpec((tile, d_pad), lambda i, j: (j, 0)),   # col tile of x
            pl.BlockSpec((tile, 1), lambda i, j: (i, 0)),       # row norms (tm, 1)
            pl.BlockSpec((1, tile), lambda i, j: (0, j)),       # col norms (1, tn)
        ],
        out_specs=pl.BlockSpec((tile, tile), lambda i, j: (i, j)),
        compiler_params=pltpu.CompilerParams(
            dimension_semantics=("parallel", "parallel"),
            vmem_limit_bytes=vmem_limit),
    )(x, x, norms[:, None], norms[None, :])
    return dist_pad[:n, :n]


def _centers_kernel(oh_ref, f_ref, inv_ref, o_ref):
    """centers = (onehot^T @ features) * (1/count)  — contraction on batch axis, no transpose."""
    s = lax.dot_general(oh_ref[...], f_ref[...], (((0,), (0,)), ((), ())),
                        preferred_element_type=jnp.float32)      # (C, td)
    o_ref[...] = s * inv_ref[...]                                 # (C, 1) broadcast


def class_centers(onehot, features, counts):
    """onehot: (b, C) f32, features: (b, d), counts: (C,) int -> centers (C, d) f32."""
    b, c = onehot.shape
    d = features.shape[1]
    d_pad = _round_up(max(d, 1), 128)
    td = _pick_center_tile(d_pad, b, c)

    f_pad = jnp.pad(features.astype(jnp.float32), ((0, 0), (0, d_pad - d)))
    inv_counts = (1.0 / jnp.maximum(counts, 1).astype(jnp.float32))[:, None]   # (C, 1)

    vmem_need = 8 * (b * c + b * td + c + c * td)
    vmem_limit = int(min(max(2 * vmem_need, 16 << 20), 48 << 20))

    centers = pl.pallas_call(
        _centers_kernel,
        out_shape=jax.ShapeDtypeStruct((c, d_pad), jnp.float32),
        grid=(d_pad // td,),
        in_specs=[
            pl.BlockSpec((b, c), lambda j: (0, 0)),
            pl.BlockSpec((b, td), lambda j: (0, j)),
            pl.BlockSpec((c, 1), lambda j: (0, 0)),
        ],
        out_specs=pl.BlockSpec((c, td), lambda j: (0, j)),
        compiler_params=pltpu.CompilerParams(
            dimension_semantics=("parallel",),
            vmem_limit_bytes=vmem_limit),
    )(onehot.astype(jnp.float32), f_pad, inv_counts)
    return centers[:, :d]


# ---------------------------------------------------------------------------
# RangeLoss forward (semantics identical to the PyTorch module; labels in [0, num_classes))
# ---------------------------------------------------------------------------
def _range_loss(features, targets, *, num_classes, k, margin, alpha, beta):
    features = features.astype(jnp.float32)
    targets = targets.astype(jnp.int32)
    b = features.shape[0]
    c = int(num_classes)
    k = int(k)

    class_ids = jnp.arange(c, dtype=jnp.int32)
    member = targets[None, :] == class_ids[:, None]          # (C, b) bool
    onehot = member.T.astype(jnp.float32)                    # (b, C)
    counts = jnp.sum(member, axis=1).astype(jnp.int32)       # (C,)
    present = counts > 0                                     # classes actually in the batch

    # ----- intra-class: sum over present classes of k / sum(1/top_k) -----------------------
    dist = pairwise_distance(features)                       # (b, b)  one tiled Pallas kernel
    kk = min(2 * k, b * b)
    pair_mask = member[:, :, None] & member[:, None, :]      # (C, b, b) same-class pairs
    masked = jnp.where(pair_mask, dist[None, :, :], -jnp.inf)
    top_vals = lax.top_k(masked.reshape(c, b * b), kk)[0]    # (C, kk) descending
    # torch: sorted_flat[-2k::2]  ==  descending indices {M-1, M-3, ...} with M = min(L, 2k)
    pair_counts = counts * counts                            # valid entries per class (L)
    m_sel = jnp.minimum(pair_counts, 2 * k)
    j = jnp.arange(kk, dtype=jnp.int32)
    sel = (j[None, :] < m_sel[:, None]) & (((m_sel[:, None] - 1 - j[None, :]) % 2) == 0)
    inv_sum = jnp.sum(jnp.where(sel, 1.0 / top_vals, 0.0), axis=1)      # (C,)
    denom = jnp.where(present, inv_sum, 1.0)
    intra_class_loss = jnp.sum(jnp.where(present, k / denom, 0.0))

    # ----- inter-class: relu(margin - sorted(flatten(center_dist))[Cp]) --------------------
    centers = class_centers(onehot, features, counts)        # (C, d)   Pallas
    cdist = pairwise_distance(centers)                       # (C, C)   Pallas
    valid = present[:, None] & present[None, :]
    flat = jnp.where(valid, cdist, jnp.inf).reshape(-1)
    kc = min(c + 1, c * c)
    smallest = -lax.top_k(-flat, kc)[0]                      # kc smallest valid entries, ascending
    num_present = jnp.sum(present.astype(jnp.int32))
    min_inter = smallest[jnp.minimum(num_present, kc - 1)]   # skips the Cp diagonal entries
    inter_class_loss = jnp.maximum(margin - min_inter, 0.0)

    return alpha * intra_class_loss + beta * inter_class_loss


class RangeLoss:
    """Range_loss = alpha * intra_class_loss + beta * inter_class_loss (forward only)."""

    def __init__(self, cls_num_list=None, k=2, margin=0.1, alpha=0.5, beta=0.5, num_classes=None):
        self.cls_num_list = cls_num_list
        self.k = int(k)
        self.margin = float(margin)
        self.alpha = float(alpha)
        self.beta = float(beta)
        if num_classes is None and cls_num_list is not None:
            num_classes = len(cls_num_list)
        self.num_classes = num_classes
        self._jitted = {}

    def __call__(self, features, targets):
        assert features.shape[0] == targets.shape[0], \
            "features.size(0) is not equal to targets.size(0)"
        c = self.num_classes
        if c is None:
            # TODO(synk): without a static class count we need one host sync to size the
            # one-hot; pass cls_num_list / num_classes to stay fully on-device.
            c = int(jax.device_get(jnp.max(targets))) + 1
        fn = self._jitted.get(c)
        if fn is None:
            fn = jax.jit(functools.partial(
                _range_loss, num_classes=c, k=self.k, margin=self.margin,
                alpha=self.alpha, beta=self.beta))
            self._jitted[c] = fn
        return fn(features, targets)


# ---------------------------------------------------------------------------
# Demo
# ---------------------------------------------------------------------------
if __name__ == "__main__":
    key = jax.random.PRNGKey(0)
    B, D = 8, 32
    features = jax.random.normal(key, (B, D), dtype=jnp.float32)
    targets = jnp.array([0, 0, 0, 1, 1, 1, 2, 2], dtype=jnp.int32)

    loss_fn = RangeLoss(cls_num_list=[3, 3, 2], k=2, margin=0.1, alpha=0.5, beta=0.5)
    range_loss = loss_fn(features, targets)
    jax.block_until_ready(range_loss)
    print("KERNEL_OK")
</pallas_src>

<mosaic_0001>
module attributes {stable_mosaic.version = 11 : i64} {
  func.func @_pairwise_dist_kernel(%arg0: i32, %arg1: i32, %arg2: memref<128x128xf32, #tpu.memory_space<vmem>>, %arg3: memref<128x128xf32, #tpu.memory_space<vmem>>, %arg4: memref<128x1xf32, #tpu.memory_space<vmem>>, %arg5: memref<1x128xf32, #tpu.memory_space<vmem>>, %arg6: memref<128x128xf32, #tpu.memory_space<vmem>>) attributes {dimension_semantics = [#tpu.dimension_semantics<parallel>, #tpu.dimension_semantics<parallel>], iteration_bounds = array<i64: 1, 1>, scalar_prefetch = 0 : i64, scratch_operands = 0 : i64, tpu.core_type = #tpu.core_type<tc>, window_params = [{transform_indices = @transform_0, window_bounds = array<i64: 128, 128>}, {transform_indices = @transform_1, window_bounds = array<i64: 128, 128>}, {transform_indices = @transform_2, window_bounds = array<i64: 128, 1>}, {transform_indices = @transform_3, window_bounds = array<i64: 1, 128>}, {transform_indices = @transform_4, window_bounds = array<i64: 128, 128>}]} {
    %c0 = arith.constant 0 : index
    %c0_0 = arith.constant 0 : index
    %0 = vector.load %arg2[%c0, %c0_0] : memref<128x128xf32, #tpu.memory_space<vmem>>, vector<128x128xf32>
    %c0_1 = arith.constant 0 : index
    %c0_2 = arith.constant 0 : index
    %1 = vector.load %arg3[%c0_1, %c0_2] : memref<128x128xf32, #tpu.memory_space<vmem>>, vector<128x128xf32>
    %cst = arith.constant dense<0.000000e+00> : vector<128x128xf32>
    %2 = tpu.matmul %0, %1, %cst {dimension_numbers = #tpu.dot_dimension_numbers<[1], [1], [0], [0], [0, 0, 1, 0], [], []>} : vector<128x128xf32>, vector<128x128xf32>, vector<128x128xf32> -> vector<128x128xf32>
    %c0_3 = arith.constant 0 : index
    %c0_4 = arith.constant 0 : index
    %3 = vector.load %arg4[%c0_3, %c0_4] : memref<128x1xf32, #tpu.memory_space<vmem>>, vector<128x1xf32>
    %c0_5 = arith.constant 0 : index
    %c0_6 = arith.constant 0 : index
    %4 = vector.load %arg5[%c0_5, %c0_6] : memref<1x128xf32, #tpu.memory_space<vmem>>, vector<1x128xf32>
    %5 = vector.broadcast %3 : vector<128x1xf32> to vector<128x128xf32>
    %6 = vector.broadcast %4 : vector<1x128xf32> to vector<128x128xf32>
    %7 = arith.addf %5, %6 : vector<128x128xf32>
    %cst_7 = arith.constant 2.000000e+00 : f32
    %8 = vector.broadcast %cst_7 : f32 to vector<128x128xf32>
    %9 = arith.mulf %8, %2 : vector<128x128xf32>
    %10 = arith.subf %7, %9 : vector<128x128xf32>
    %cst_8 = arith.constant 9.99999996E-13 : f32
    %11 = vector.broadcast %cst_8 : f32 to vector<128x128xf32>
    %12 = arith.maximumf %10, %11 : vector<128x128xf32>
    %13 = math.sqrt %12 : vector<128x128xf32>
    %c0_9 = arith.constant 0 : index
    %c0_10 = arith.constant 0 : index
    %14 = vector.load %arg6[%c0_9, %c0_10] : memref<128x128xf32, #tpu.memory_space<vmem>>, vector<128x128xf32>
    tpu.vector_store %arg6[%c0_9, %c0_10], %13 {strides = array<i32>} : memref<128x128xf32, #tpu.memory_space<vmem>>, vector<128x128xf32>,
    return
  }
  func.func @transform_0(%arg0: i32, %arg1: i32) -> (i32, i32) {
    %c0_i32 = arith.constant 0 : i32
    %c0_i32_0 = arith.constant 0 : i32
    return %arg0, %c0_i32 : i32, i32
  }
  func.func @transform_1(%arg0: i32, %arg1: i32) -> (i32, i32) {
    %c0_i32 = arith.constant 0 : i32
    %c0_i32_0 = arith.constant 0 : i32
    return %arg1, %c0_i32 : i32, i32
  }
  func.func @transform_2(%arg0: i32, %arg1: i32) -> (i32, i32) {
    %c0_i32 = arith.constant 0 : i32
    %c0_i32_0 = arith.constant 0 : i32
    return %arg0, %c0_i32 : i32, i32
  }
  func.func @transform_3(%arg0: i32, %arg1: i32) -> (i32, i32) {
    %c0_i32 = arith.constant 0 : i32
    %c0_i32_0 = arith.constant 0 : i32
    return %c0_i32, %arg1 : i32, i32
  }
  func.func @transform_4(%arg0: i32, %arg1: i32) -> (i32, i32) {
    %c0_i32 = arith.constant 0 : i32
    return %arg0, %arg1 : i32, i32
  }
}

module attributes {stable_mosaic.version = 11 : i64} {
  func.func @_centers_kernel(%arg0: i32, %arg1: memref<8x3xf32, #tpu.memory_space<vmem>>, %arg2: memref<8x128xf32, #tpu.memory_space<vmem>>, %arg3: memref<3x1xf32, #tpu.memory_space<vmem>>, %arg4: memref<3x128xf32, #tpu.memory_space<vmem>>) attributes {dimension_semantics = [#tpu.dimension_semantics<parallel>], iteration_bounds = array<i64: 1>, scalar_prefetch = 0 : i64, scratch_operands = 0 : i64, tpu.core_type = #tpu.core_type<tc>, window_params = [{pipeline_mode = #tpu.pipeline_mode<synchronous>, transform_indices = @transform_0, window_bounds = array<i64: 8, 3>}, {transform_indices = @transform_1, window_bounds = array<i64: 8, 128>}, {pipeline_mode = #tpu.pipeline_mode<synchronous>, transform_indices = @transform_2, window_bounds = array<i64: 3, 1>}, {transform_indices = @transform_3, window_bounds = array<i64: 3, 128>}]} {
    %c0 = arith.constant 0 : index
    %c0_0 = arith.constant 0 : index
    %0 = vector.load %arg1[%c0, %c0_0] : memref<8x3xf32, #tpu.memory_space<vmem>>, vector<8x3xf32>
    %c0_1 = arith.constant 0 : index
    %c0_2 = arith.constant 0 : index
    %1 = vector.load %arg2[%c0_1, %c0_2] : memref<8x128xf32, #tpu.memory_space<vmem>>, vector<8x128xf32>
    %cst = arith.constant dense<0.000000e+00> : vector<3x128xf32>
    %2 = tpu.matmul %0, %1, %cst {dimension_numbers = #tpu.dot_dimension_numbers<[0], [0], [1], [1], [0, 1, 1, 1], [], []>} : vector<8x3xf32>, vector<8x128xf32>, vector<3x128xf32> -> vector<3x128xf32>
    %c0_3 = arith.constant 0 : index
    %c0_4 = arith.constant 0 : index
    %3 = vector.load %arg3[%c0_3, %c0_4] : memref<3x1xf32, #tpu.memory_space<vmem>>, vector<3x1xf32>
    %4 = vector.broadcast %3 : vector<3x1xf32> to vector<3x128xf32>
    %5 = arith.mulf %2, %4 : vector<3x128xf32>
    %c0_5 = arith.constant 0 : index
    %c0_6 = arith.constant 0 : index
    %6 = vector.load %arg4[%c0_5, %c0_6] : memref<3x128xf32, #tpu.memory_space<vmem>>, vector<3x128xf32>
    tpu.vector_store %arg4[%c0_5, %c0_6], %5 {strides = array<i32>} : memref<3x128xf32, #tpu.memory_space<vmem>>, vector<3x128xf32>,
    return
  }
  func.func @transform_0(%arg0: i32) -> (i32, i32) {
    %c0_i32 = arith.constant 0 : i32
    %c0_i32_0 = arith.constant 0 : i32
    %c0_i32_1 = arith.constant 0 : i32
    return %c0_i32, %c0_i32_0 : i32, i32
  }
  func.func @transform_1(%arg0: i32) -> (i32, i32) {
    %c0_i32 = arith.constant 0 : i32
    %c0_i32_0 = arith.constant 0 : i32
    return %c0_i32, %arg0 : i32, i32
  }
  func.func @transform_2(%arg0: i32) -> (i32, i32) {
    %c0_i32 = arith.constant 0 : i32
    %c0_i32_0 = arith.constant 0 : i32
    %c0_i32_1 = arith.constant 0 : i32
    return %c0_i32, %c0_i32_0 : i32, i32
  }
  func.func @transform_3(%arg0: i32) -> (i32, i32) {
    %c0_i32 = arith.constant 0 : i32
    %c0_i32_0 = arith.constant 0 : i32
    return %c0_i32, %arg0 : i32, i32
  }
}

</mosaic_0001>

<bundles_post_ra>
// kernel: _range_loss.3
= control target key start
LH: loop header
LB: loop body
LE: loop exit
PB: predicated region body
PF: predicated region fallthrough
CT: control target
= control target key end

     0   :  { %v665_v3 = vmov 0   ;;  %s1056_s1 = inlined_call_operand.vmem [shape: f32[128,128], index: 1, kind: input, shape index: {}, may-alias: {0,1}]   ;;  %s1057_s0 = inlined_call_operand.vmem [shape: f32[128,128], index: 0, kind: input, shape index: {}, may-alias: {0,1}]   ;;  %s1058_s2 = inlined_call_operand.vmem [shape: f32[128,1], index: 2, kind: input, shape index: {}]   ;;  %s1059_s3 = inlined_call_operand.vmem [shape: f32[1,128], index: 3, kind: input, shape index: {}]   ;;  %s1060_s4 = inlined_call_operand.vmem [shape: f32[128,128], index: 4, kind: output, shape index: {}]  }
   0x1   :  { %v33_v0 = vld [vmem:[%s1056_s1] sm:$0xff]  ;;  %v34_v1 = vld [vmem:[%s1056_s1 + $0x8] sm:$0xff]  ;;  %v35_v2 = vld [vmem:[%s1056_s1 + $0x10] sm:$0xff]  ;;  %632 = vset.pattern.permute.xlu1 %v665_v3  ;;  %631 = vset.pattern.permute.xlu0 %v665_v3 }
   0x2   :  { %v582_v4 = vpack.c.bf16 %v34_v1, %v33_v0  ;;  %v36_v5 = vld [vmem:[%s1056_s1 + $0x18] sm:$0xff]  ;;  %v17_v7 = vld [vmem:[%s1057_s0] sm:$0xff]  ;;  %v38_v10 = vld [vmem:[%s1056_s1 + $0x28] sm:$0xff] }
   0x3   :  { %v586_v6 = vpack.c.bf16 %v36_v5, %v35_v2  ;;  %v25_v8 = vld [vmem:[%s1057_s0 + $0x40] sm:$0xff]  ;;  %558 = vmatprep.mubr.f32.mxu0 %v17_v7  ;;  %v196_v12 = vld [vmem:[%s1058_s2 + $0x10] sm:$0xff]  ;;  %v197_v14 = vld [vmem:[%s1058_s2 + $0x18] sm:$0xff] }
   0x4   :  { %583 = vmatprep.subr.bf16.mxu0 %v582_v4  ;;  %614 = vmatprep.subr.bf16.mxu1 %v582_v4  ;;  %v37_v9 = vld [vmem:[%s1056_s1 + $0x20] sm:$0xff]  ;;  %v39_v15 = vld [vmem:[%s1056_s1 + $0x30] sm:$0xff]  ;;  %v40_v16 = vld [vmem:[%s1056_s1 + $0x38] sm:$0xff] }
   0x5   :  { %585 = vmatpush3.bf16.xpose.msra.mxu0 %v582_v4  ;;  %622 = vmatpush3.bf16.xpose.msra.mxu1 %v582_v4  ;;  %v590_v11 = vpack.c.bf16 %v38_v10, %v37_v9  ;;  %v194_v13 = vld [vmem:[%s1058_s2] sm:$0xff]  ;;  %v195_v17 = vld [vmem:[%s1058_s2 + $0x8] sm:$0xff]  ;;  %v594_v19 = vpack.c.bf16 %v40_v16, %v39_v15  ;;  %v201_v21 = vld [vmem:[%s1058_s2 + $0x38] sm:$0xff] }
   0x6   :  { %587 = vmatprep.subr.bf16.mxu0 %v586_v6  ;;  %615 = vmatprep.subr.bf16.mxu1 %v586_v6  ;;  %v199_v18 = vld [vmem:[%s1058_s2 + $0x28] sm:$0xff]  ;;  %v198_v20 = vld [vmem:[%s1058_s2 + $0x20] sm:$0xff]  ;;  %v200_v24 = vld [vmem:[%s1058_s2 + $0x30] sm:$0xff] }
   0x7   :  { %570 = vmatprep.mubr.f32.mxu1 %v25_v8  ;;  %223 = vperm.xlu1 %632, %v196_v12   ;;  %v41_v22 = vld [vmem:[%s1056_s1 + $0x40] sm:$0xff]  ;;  %v42_v23 = vld [vmem:[%s1056_s1 + $0x48] sm:$0xff]  ;;  %v205_v28 = vld [vmem:[%s1058_s2 + $0x58] sm:$0xff] }
   0x8   :  { %213 = vperm.xlu0 %631, %v194_v13   ;;  %v203_v25 = vld [vmem:[%s1058_s2 + $0x48] sm:$0xff]  ;;  %v598_v26 = vpack.c.bf16 %v42_v23, %v41_v22  ;;  %v202_v27 = vld [vmem:[%s1058_s2 + $0x40] sm:$0xff]  ;;  %v43_v29 = vld [vmem:[%s1056_s1 + $0x50] sm:$0xff] }
   0x9   :  { %v44_v30 = vld [vmem:[%s1056_s1 + $0x58] sm:$0xff]  ;;  %v204_v31 = vld [vmem:[%s1058_s2 + $0x50] sm:$0xff]  ;;  %v207_v32 = vld [vmem:[%s1058_s2 + $0x68] sm:$0xff] }
   0xa   :  { %v602_v33 = vpack.c.bf16 %v44_v30, %v43_v29  ;;  %v206_v34 = vld [vmem:[%s1058_s2 + $0x60] sm:$0xff]  ;;  %v209_v35 = vld [vmem:[%s1058_s2 + $0x78] sm:$0xff]  ;;  %v46_v37 = vld [vmem:[%s1056_s1 + $0x68] sm:$0xff] }
   0xb   :  { %228 = vperm.xlu1 %632, %v197_v14   ;;  %v45_v36 = vld [vmem:[%s1056_s1 + $0x60] sm:$0xff]  ;;  %v208_v38 = vld [vmem:[%s1058_s2 + $0x70] sm:$0xff]  ;;  %v48_v41 = vld [vmem:[%s1056_s1 + $0x78] sm:$0xff] }
   0xc   :  { %218 = vperm.xlu0 %631, %v195_v17   ;;  %v606_v39 = vpack.c.bf16 %v46_v37, %v45_v36  ;;  %v47_v40 = vld [vmem:[%s1056_s1 + $0x70] sm:$0xff]  ;;  %v18_v43 = vld [vmem:[%s1057_s0 + $0x8] sm:$0xff]  ;;  %v20_v47 = vld [vmem:[%s1057_s0 + $0x18] sm:$0xff] }
   0xd   :  { %589 = vmatpush3.bf16.xpose.msra.mxu0 %v586_v6  ;;  %623 = vmatpush3.bf16.xpose.msra.mxu1 %v586_v6  ;;  %v610_v42 = vpack.c.bf16 %v48_v41, %v47_v40  ;;  %v26_v44 = vld [vmem:[%s1057_s0 + $0x48] sm:$0xff]  ;;  %v19_v45 = vld [vmem:[%s1057_s0 + $0x10] sm:$0xff]  ;;  %v28_v48 = vld [vmem:[%s1057_s0 + $0x58] sm:$0xff] }
   0xe   :  { %591 = vmatprep.subr.bf16.mxu0 %v590_v11  ;;  %616 = vmatprep.subr.bf16.mxu1 %v590_v11  ;;  %v27_v46 = vld [vmem:[%s1057_s0 + $0x50] sm:$0xff]  ;;  %v21_v49 = vld [vmem:[%s1057_s0 + $0x20] sm:$0xff]  ;;  %v22_v51 = vld [vmem:[%s1057_s0 + $0x28] sm:$0xff] }
   0xf   :  { %238 = vperm.xlu1 %632, %v199_v18   ;;  %v29_v50 = vld [vmem:[%s1057_s0 + $0x60] sm:$0xff]  ;;  %v30_v52 = vld [vmem:[%s1057_s0 + $0x68] sm:$0xff]  ;;  %v23_v53 = vld [vmem:[%s1057_s0 + $0x30] sm:$0xff] }
  0x10   :  { %233 = vperm.xlu0 %631, %v198_v20   ;;  %v31_v54 = vld [vmem:[%s1057_s0 + $0x70] sm:$0xff]  ;;  %v24_v55 = vld [vmem:[%s1057_s0 + $0x38] sm:$0xff]  ;;  %v493_v5 = vld [vmem:[%s1059_s3] ss:$0 sm:$0xff] }
  0x11   :  { %v32_v56 = vld [vmem:[%s1057_s0 + $0x78] sm:$0xff] }
  0x13   :  { %248 = vperm.xlu1 %632, %v201_v21  }
  0x14   :  { %243 = vperm.xlu0 %631, %v200_v24  }
  0x15   :  { %593 = vmatpush3.bf16.xpose.msra.mxu0 %v590_v11  ;;  %624 = vmatpush3.bf16.xpose.msra.mxu1 %v590_v11 }
  0x16   :  { %595 = vmatprep.subr.bf16.mxu0 %v594_v19  ;;  %617 = vmatprep.subr.bf16.mxu1 %v594_v19 }
  0x17   :  { %258 = vperm.xlu1 %632, %v203_v25  }
  0x18   :  { %253 = vperm.xlu0 %631, %v202_v27  }
  0x1b   :  { %268 = vperm.xlu1 %632, %v205_v28  }
  0x1c   :  { %263 = vperm.xlu0 %631, %v204_v31  }
  0x1d   :  { %597 = vmatpush3.bf16.xpose.msra.mxu0 %v594_v19  ;;  %625 = vmatpush3.bf16.xpose.msra.mxu1 %v594_v19 }
  0x1e   :  { %599 = vmatprep.subr.bf16.mxu0 %v598_v26  ;;  %618 = vmatprep.subr.bf16.mxu1 %v598_v26 }
  0x1f   :  { %278 = vperm.xlu1 %632, %v207_v32  }
  0x20   :  { %273 = vperm.xlu0 %631, %v206_v34  }
  0x23   :  { %288 = vperm.xlu1 %632, %v209_v35  }
  0x24   :  { %283 = vperm.xlu0 %631, %v208_v38  }
  0x25   :  { %601 = vmatpush3.bf16.xpose.msra.mxu0 %v598_v26  ;;  %626 = vmatpush3.bf16.xpose.msra.mxu1 %v598_v26 }
  0x26   :  { %603 = vmatprep.subr.bf16.mxu0 %v602_v33  ;;  %619 = vmatprep.subr.bf16.mxu1 %v602_v33 }
  0x2d   :  { %605 = vmatpush3.bf16.xpose.msra.mxu0 %v602_v33  ;;  %627 = vmatpush3.bf16.xpose.msra.mxu1 %v602_v33 }
  0x2e   :  { %607 = vmatprep.subr.bf16.mxu0 %v606_v39  ;;  %620 = vmatprep.subr.bf16.mxu1 %v606_v39 }
  0x35   :  { %609 = vmatpush3.bf16.xpose.msra.mxu0 %v606_v39  ;;  %628 = vmatpush3.bf16.xpose.msra.mxu1 %v606_v39 }
  0x36   :  { %611 = vmatprep.subr.bf16.mxu0 %v610_v42  ;;  %621 = vmatprep.subr.bf16.mxu1 %v610_v42 }
  0x3d   :  { %613 = vmatpush3.bf16.xpose.msra.mxu0 %v610_v42  ;;  %629 = vmatpush3.bf16.xpose.msra.mxu1 %v610_v42 }
  0x44   :  { %559 = vmatmul.mubr.f32.vlgmr.msra.gmra.mrb[0].mxu0 %v18_v43  ;;  %571 = vmatmul.mubr.f32.vlgmr.msra.gmra.mrb[0].mxu1 %v26_v44 }
  0x45   :  { %561 = vmatprep.mubr.f32.mxu0 %v19_v45  ;;  %573 = vmatprep.mubr.f32.mxu1 %v27_v46 }
  0x48   :  { %562 = vmatmul.mubr.f32.gmra.mrb[2].mxu0 %v20_v47  ;;  %574 = vmatmul.mubr.f32.gmra.mrb[2].mxu1 %v28_v48 }
  0x49   :  { %564 = vmatprep.mubr.f32.mxu0 %v21_v49  ;;  %576 = vmatprep.mubr.f32.mxu1 %v29_v50 }
  0x4c   :  { %565 = vmatmul.mubr.f32.gmra.mrb[4].mxu0 %v22_v51  ;;  %577 = vmatmul.mubr.f32.gmra.mrb[4].mxu1 %v30_v52 }
  0x4d   :  { %567 = vmatprep.mubr.f32.mxu0 %v23_v53  ;;  %579 = vmatprep.mubr.f32.mxu1 %v31_v54 }
  0x50   :  { %568 = vmatmul.mubr.f32.gmra.mrb[6].mxu0 %v24_v55  ;;  %580 = vmatmul.mubr.f32.gmra.mrb[6].mxu1 %v32_v56 }
  0x86   :  { %v224_v57 = vpop.permute.xlu1 %223 }
  0x87   :  { %v214_v58 = vpop.permute.xlu0 %213  ;;  %v299_v28 = vadd.f32 %v493_v5, %v224_v57 }
  0x88   :  { %v297_v16 = vadd.f32 %v493_v5, %v214_v58 }
  0x8a   :  { %v229_v59 = vpop.permute.xlu1 %228 }
  0x8b   :  { %v219_v60 = vpop.permute.xlu0 %218  ;;  %v300_v33 = vadd.f32 %v493_v5, %v229_v59 }
  0x8c   :  { %v298_v10 = vadd.f32 %v493_v5, %v219_v60 }
  0x8e   :  { %v239_v61 = vpop.permute.xlu1 %238 }
  0x8f   :  { %v234_v62 = vpop.permute.xlu0 %233  ;;  %v302_v38 = vadd.f32 %v493_v5, %v239_v61 }
  0x90   :  { %v847_v39 = vadd.f32 %v493_v5, %v234_v62 }
  0x92   :  { %v249_v63 = vpop.permute.xlu1 %248 }
  0x93   :  { %v244_v0 = vpop.permute.xlu0 %243  ;;  %v849_v40 = vadd.f32 %v493_v5, %v249_v63 }
  0x94   :  { %v852_v43 = vadd.f32 %v493_v5, %v244_v0 }
  0x96   :  { %v259_v1 = vpop.permute.xlu1 %258 }
  0x97   :  { %v254_v2 = vpop.permute.xlu0 %253  ;;  %v306_v11 = vadd.f32 %v493_v5, %v259_v1 }
  0x98   :  { %v305_v17 = vadd.f32 %v493_v5, %v254_v2 }
  0x9a   :  { %v269_v3 = vpop.permute.xlu1 %268 }
  0x9b   :  { %v264_v4 = vpop.permute.xlu0 %263  ;;  %v308_v44 = vadd.f32 %v493_v5, %v269_v3 }
  0x9c   :  { %v307_v45 = vadd.f32 %v493_v5, %v264_v4 }
  0x9e   :  { %v279_v6 = vpop.permute.xlu1 %278 }
  0x9f   :  { %v274_v7 = vpop.permute.xlu0 %273  ;;  %v310_v48 = vadd.f32 %v493_v5, %v279_v6 }
  0xa0   :  { %v855_v49 = vadd.f32 %v493_v5, %v274_v7 }
  0xa2   :  { %v289_v34 = vpop.permute.xlu1 %288 }
  0xa3   :  { %v284_v35 = vpop.permute.xlu0 %283  ;;  %v857_v50 = vadd.f32 %v493_v5, %v289_v34 }
  0xa4   :  { %v860_v55 = vadd.f32 %v493_v5, %v284_v35 }
 0x117   :  { %v560_v8 = vpop.f32.mrb[0].mxu0  ;;  %v572_v9 = vpop.f32.mrb[0].mxu1 }
 0x118   :  { %v314_v12 = vmul.f32 2.0, %v560_v8  ;;  %v322_v13 = vmul.f32 2.0, %v572_v9  ;;  %v115_v14 = vpop.f32.mrb[1].mxu0  ;;  %v155_v15 = vpop.f32.mrb[1].mxu1 }
 0x119   :  { %v313_v18 = vmul.f32 2.0, %v115_v14  ;;  %v321_v19 = vmul.f32 2.0, %v155_v15 }
 0x11a   :  { %v330_v20 = vsub.f32 %v298_v10, %v314_v12  ;;  %v338_v21 = vsub.f32 %v306_v11, %v322_v13 }
 0x11b   :  { %v329_v22 = vsub.f32 %v297_v16, %v313_v18  ;;  %v337_v23 = vsub.f32 %v305_v17, %v321_v19  ;;  %v563_v24 = vpop.f32.mrb[2].mxu0  ;;  %v575_v25 = vpop.f32.mrb[2].mxu1 }
 0x11c   :  { %v838_v26 = vmax.f32 %v330_v20, 1e-12  ;;  %v840_v27 = vmax.f32 %v338_v21, 1e-12  ;;  %v125_v31 = vpop.f32.mrb[3].mxu0  ;;  %v165_v32 = vpop.f32.mrb[3].mxu1 }
 0x11d   :  { %v842_v29 = vmax.f32 %v329_v22, 1e-12  ;;  %v844_v30 = vmax.f32 %v337_v23, 1e-12  ;;  %v316_v36 = vmul.f32 2.0, %v563_v24  ;;  %v324_v37 = vmul.f32 2.0, %v575_v25 }
 0x11e   :  { %633 = vrsqrt.f32 %v838_v26  ;;  %v315_v53 = vmul.f32 2.0, %v125_v31  ;;  %v323_v54 = vmul.f32 2.0, %v165_v32  ;;  %vm370_vm0 = vcmp.eq.f32.partialorder %v838_v26, inf }
 0x11f   :  { %635 = vrsqrt.f32 %v840_v27  ;;  %v566_v41 = vpop.f32.mrb[4].mxu0  ;;  %v578_v42 = vpop.f32.mrb[4].mxu1  ;;  %v332_v51 = vsub.f32 %v300_v33, %v316_v36  ;;  %v340_v52 = vsub.f32 %v308_v44, %v324_v37  ;;  %vm372_vm1 = vcmp.eq.f32.partialorder %v838_v26, 0.0 }
 0x120   :  { %637 = vrsqrt.f32 %v842_v29  ;;  %v135_v46 = vpop.f32.mrb[5].mxu0  ;;  %v175_v47 = vpop.f32.mrb[5].mxu1  ;;  %v318_v56 = vmul.f32 2.0, %v566_v41  ;;  %v326_v57 = vmul.f32 2.0, %v578_v42  ;;  %v331_v63 = vsub.f32 %v299_v28, %v315_v53 }
 0x121   :  { %639 = vrsqrt.f32 %v844_v30  ;;  %v317_v58 = vmul.f32 2.0, %v135_v46  ;;  %v866_v61 = vmax.f32 %v332_v51, 1e-12  ;;  %v868_v62 = vmax.f32 %v340_v52, 1e-12 }
 0x122   :  { %v339_v0 = vsub.f32 %v307_v45, %v323_v54  ;;  %v373_v3 = vand.u32 2147483648, %v838_v26  ;;  %vm426_vm2 = vcmp.eq.f32.partialorder %v840_v27, inf  ;;  %vm428_vm3 = vcmp.eq.f32.partialorder %v840_v27, 0.0 }
 0x123   :  { %v862_v59 = vpop.f32.mrb[6].mxu0  ;;  %v864_v60 = vpop.f32.mrb[6].mxu1  ;;  %641 = vrsqrt.f32 %v866_v61  ;;  %v334_v4 = vsub.f32 %v302_v38, %v318_v56  ;;  %v325_v5 = vmul.f32 2.0, %v175_v47  ;;  %v429_v6 = vand.u32 2147483648, %v840_v27 }
 0x124   :  { %v870_v1 = vpop.f32.mrb[7].mxu0  ;;  %v872_v2 = vpop.f32.mrb[7].mxu1  ;;  %vm363_vm4 = vcmp.eq.f32.partialorder %v842_v29, inf  ;;  %643 = vrsqrt.f32 %v868_v62  ;;  %v342_v7 = vsub.f32 %v310_v48, %v326_v57  ;;  %vm365_vm5 = vcmp.eq.f32.partialorder %v842_v29, 0.0 }
 0x125   :  { %v884_v9 = vmax.f32 %v331_v63, 1e-12  ;;  %v886_v10 = vmax.f32 %v339_v0, 1e-12  ;;  %v333_v11 = vsub.f32 %v847_v39, %v317_v58  ;;  %v366_v14 = vand.u32 2147483648, %v842_v29 }
 0x126   :  { %vm419_vm6 = vcmp.eq.f32.partialorder %v844_v30, inf  ;;  %vm421_vm7 = vcmp.eq.f32.partialorder %v844_v30, 0.0  ;;  %v895_v17 = vmax.f32 %v334_v4, 1e-12  ;;  %v341_v18 = vsub.f32 %v855_v49, %v325_v5 }
 0x127   :  { %645 = vrsqrt.f32 %v884_v9  ;;  %v903_v22 = vmax.f32 %v342_v7, 1e-12  ;;  %v911_v28 = vmax.f32 %v333_v11, 1e-12  ;;  %v422_v32 = vand.u32 2147483648, %v844_v30 }
 0x128   :  { %v634_v8 = vpop.eup %633  ;;  %647 = vrsqrt.f32 %v886_v10  ;;  %vm384_vm8 = vcmp.eq.f32.partialorder %v866_v61, inf  ;;  %v932_v34 = vmax.f32 %v341_v18, 1e-12  ;;  %vm386_vm9 = vcmp.eq.f32.partialorder %v866_v61, 0.0 }
 0x129   :  { %v636_v12 = vpop.eup %635  ;;  %v369_v13 = vmul.f32 %v634_v8, %v838_v26  ;;  %649 = vrsqrt.f32 %v895_v17  ;;  %vm440_vm10 = vcmp.eq.f32.partialorder %v868_v62, inf  ;;  %vm442_vm11 = vcmp.eq.f32.partialorder %v868_v62, 0.0 }
 0x12a   :  { %v638_v15 = vpop.eup %637  ;;  %v425_v16 = vmul.f32 %v636_v12, %v840_v27  ;;  %651 = vrsqrt.f32 %v903_v22  ;;  %v443_v37 = vand.u32 2147483648, %v868_v62  ;;  %vm377_vm12 = vcmp.eq.f32.partialorder %v884_v9, inf }
 0x12b   :  { %v640_v19 = vpop.eup %639  ;;  %v371_v20 = vsel %vm370_vm0, %v838_v26, %v369_v13  ;;  %v362_v21 = vmul.f32 %v638_v15, %v842_v29  ;;  %653 = vrsqrt.f32 %v911_v28  ;;  %vm379_vm13 = vcmp.eq.f32.partialorder %v884_v9, 0.0 }
 0x12c   :  { %v374_v23 = vsel %vm372_vm1, %v373_v3, %v371_v20  ;;  %v427_v24 = vsel %vm426_vm2, %v840_v27, %v425_v16  ;;  %v418_v25 = vmul.f32 %v640_v19, %v844_v30  ;;  %v380_v39 = vand.u32 2147483648, %v884_v9 }
 0x12d   :  { %474 = vst [vmem:[%s1060_s4 + $0x8] sm:$0xff] %v374_v23  ;;  %v430_v31 = vsel %vm428_vm3, %v429_v6, %v427_v24  ;;  %v364_v26 = vsel %vm363_vm4, %v842_v29, %v362_v21  ;;  %v387_v29 = vand.u32 2147483648, %v866_v61  ;;  %v642_v36 = vpop.eup %641  ;;  %vm433_vm14 = vcmp.eq.f32.partialorder %v886_v10, inf }
 0x12e   :  { %482 = vst [vmem:[%s1060_s4 + $0x48] sm:$0xff] %v430_v31  ;;  %v367_v33 = vsel %vm365_vm5, %v366_v14, %v364_v26  ;;  %v420_v27 = vsel %vm419_vm6, %v844_v30, %v418_v25  ;;  %v644_v30 = vpop.eup %643  ;;  %v383_v38 = vmul.f32 %v642_v36, %v866_v61  ;;  %vm435_vm15 = vcmp.eq.f32.partialorder %v886_v10, 0.0 }
 0x12f   :  { %473 = vst [vmem:[%s1060_s4] sm:$0xff] %v367_v33  ;;  %v423_v35 = vsel %vm421_vm7, %v422_v32, %v420_v27  ;;  %v439_v41 = vmul.f32 %v644_v30, %v868_v62  ;;  %655 = vrsqrt.f32 %v932_v34  ;;  %v436_v44 = vand.u32 2147483648, %v886_v10 }
 0x130   :  { %481 = vst [vmem:[%s1060_s4 + $0x40] sm:$0xff] %v423_v35  ;;  %v385_v42 = vsel %vm384_vm8, %v866_v61, %v383_v38  ;;  %v320_v45 = vmul.f32 2.0, %v862_v59  ;;  %v328_v46 = vmul.f32 2.0, %v864_v60  ;;  %v319_v51 = vmul.f32 2.0, %v870_v1 }
 0x131   :  { %v646_v47 = vpop.eup %645  ;;  %v388_v48 = vsel %vm386_vm9, %v387_v29, %v385_v42  ;;  %v441_v49 = vsel %vm440_vm10, %v868_v62, %v439_v41  ;;  %v327_v52 = vmul.f32 2.0, %v872_v2  ;;  %vm398_vm0 = vcmp.eq.f32.partialorder %v895_v17, inf }
 0x132   :  { %v648_v53 = vpop.eup %647  ;;  %476 = vst [vmem:[%s1060_s4 + $0x18] sm:$0xff] %v388_v48  ;;  %v444_v54 = vsel %vm442_vm11, %v443_v37, %v441_v49  ;;  %v376_v56 = vmul.f32 %v646_v47, %v884_v9  ;;  %v336_v57 = vsub.f32 %v849_v40, %v320_v45  ;;  %v344_v58 = vsub.f32 %v857_v50, %v328_v46 }
 0x133   :  { %484 = vst [vmem:[%s1060_s4 + $0x58] sm:$0xff] %v444_v54  ;;  %v432_v59 = vmul.f32 %v648_v53, %v886_v10  ;;  %v335_v60 = vsub.f32 %v852_v43, %v319_v51  ;;  %v343_v61 = vsub.f32 %v860_v55, %v327_v52  ;;  %vm400_vm1 = vcmp.eq.f32.partialorder %v895_v17, 0.0  ;;  %v650_v63 = vpop.eup %649 }
 0x134   :  { %v378_v62 = vsel %vm377_vm12, %v884_v9, %v376_v56  ;;  %v352_v40 = vmax.f32 %v336_v57, 1e-12  ;;  %v360_v50 = vmax.f32 %v344_v58, 1e-12  ;;  %v401_v43 = vand.u32 2147483648, %v895_v17  ;;  %v652_v55 = vpop.eup %651 }
 0x135   :  { %v381_v0 = vsel %vm379_vm13, %v380_v39, %v378_v62  ;;  %v434_v1 = vsel %vm433_vm14, %v886_v10, %v432_v59  ;;  %v995_v2 = vmax.f32 %v335_v60, 1e-12  ;;  %v397_v4 = vmul.f32 %v650_v63, %v895_v17  ;;  %v654_v5 = vpop.eup %653 }
 0x136   :  { %475 = vst [vmem:[%s1060_s4 + $0x10] sm:$0xff] %v381_v0  ;;  %v437_v3 = vsel %vm435_vm15, %v436_v44, %v434_v1  ;;  %vm454_vm2 = vcmp.eq.f32.partialorder %v903_v22, inf  ;;  %657 = vrsqrt.f32 %v352_v40  ;;  %v453_v6 = vmul.f32 %v652_v55, %v903_v22 }
 0x137   :  { %483 = vst [vmem:[%s1060_s4 + $0x50] sm:$0xff] %v437_v3  ;;  %vm456_vm3 = vcmp.eq.f32.partialorder %v903_v22, 0.0  ;;  %659 = vrsqrt.f32 %v360_v50  ;;  %v359_v7 = vmax.f32 %v343_v61, 1e-12  ;;  %v399_v8 = vsel %vm398_vm0, %v895_v17, %v397_v4 }
 0x138   :  { %v457_v9 = vand.u32 2147483648, %v903_v22  ;;  %v390_v10 = vmul.f32 %v654_v5, %v911_v28  ;;  %vm391_vm4 = vcmp.eq.f32.partialorder %v911_v28, inf  ;;  %v402_v12 = vsel %vm400_vm1, %v401_v43, %v399_v8 }
 0x139   :  { %v656_v11 = vpop.eup %655  ;;  %v455_v13 = vsel %vm454_vm2, %v903_v22, %v453_v6  ;;  %v394_v14 = vand.u32 2147483648, %v911_v28  ;;  %661 = vrsqrt.f32 %v995_v2  ;;  %478 = vst [vmem:[%s1060_s4 + $0x28] sm:$0xff] %v402_v12  ;;  %vm393_vm5 = vcmp.eq.f32.partialorder %v911_v28, 0.0 }
 0x13a   :  { %v458_v15 = vsel %vm456_vm3, %v457_v9, %v455_v13  ;;  %v392_v16 = vsel %vm391_vm4, %v911_v28, %v390_v10  ;;  %v446_v18 = vmul.f32 %v656_v11, %v932_v34  ;;  %vm447_vm6 = vcmp.eq.f32.partialorder %v932_v34, inf }
 0x13b   :  { %486 = vst [vmem:[%s1060_s4 + $0x68] sm:$0xff] %v458_v15  ;;  %v395_v17 = vsel %vm393_vm5, %v394_v14, %v392_v16  ;;  %v450_v19 = vand.u32 2147483648, %v932_v34  ;;  %663 = vrsqrt.f32 %v359_v7  ;;  %vm449_vm7 = vcmp.eq.f32.partialorder %v932_v34, 0.0 }
 0x13c   :  { %477 = vst [vmem:[%s1060_s4 + $0x20] sm:$0xff] %v395_v17  ;;  %v448_v20 = vsel %vm447_vm6, %v932_v34, %v446_v18  ;;  %vm412_vm8 = vcmp.eq.f32.partialorder %v352_v40, inf  ;;  %v415_v25 = vand.u32 2147483648, %v352_v40  ;;  %vm414_vm9 = vcmp.eq.f32.partialorder %v352_v40, 0.0 }
 0x13d   :  { %v451_v21 = vsel %vm449_vm7, %v450_v19, %v448_v20  ;;  %vm468_vm10 = vcmp.eq.f32.partialorder %v360_v50, inf  ;;  %v471_v32 = vand.u32 2147483648, %v360_v50  ;;  %vm470_vm11 = vcmp.eq.f32.partialorder %v360_v50, 0.0 }
 0x13e   :  { %485 = vst [vmem:[%s1060_s4 + $0x60] sm:$0xff] %v451_v21  ;;  %vm405_vm12 = vcmp.eq.f32.partialorder %v995_v2, inf  ;;  %v408_v36 = vand.u32 2147483648, %v995_v2  ;;  %vm407_vm13 = vcmp.eq.f32.partialorder %v995_v2, 0.0  ;;  %vm461_vm14 = vcmp.eq.f32.partialorder %v359_v7, inf }
 0x13f   :  { %v464_v39 = vand.u32 2147483648, %v359_v7  ;;  %vm463_vm15 = vcmp.eq.f32.partialorder %v359_v7, 0.0 }
 0x140   :  { %v658_v22 = vpop.eup %657 }
 0x141   :  { %v660_v23 = vpop.eup %659  ;;  %v411_v24 = vmul.f32 %v658_v22, %v352_v40 }
 0x142   :  { %v467_v28 = vmul.f32 %v660_v23, %v360_v50 }
 0x143   :  { %v662_v31 = vpop.eup %661  ;;  %v413_v26 = vsel %vm412_vm8, %v352_v40, %v411_v24 }
 0x144   :  { %v416_v33 = vsel %vm414_vm9, %v415_v25, %v413_v26  ;;  %v469_v27 = vsel %vm468_vm10, %v360_v50, %v467_v28  ;;  %v404_v34 = vmul.f32 %v662_v31, %v995_v2 }
 0x145   :  { %v664_v35 = vpop.eup %663  ;;  %480 = vst [vmem:[%s1060_s4 + $0x38] sm:$0xff] %v416_v33  ;;  %v472_v29 = vsel %vm470_vm11, %v471_v32, %v469_v27 }
 0x146   :  { %488 = vst [vmem:[%s1060_s4 + $0x78] sm:$0xff] %v472_v29  ;;  %v406_v37 = vsel %vm405_vm12, %v995_v2, %v404_v34  ;;  %v460_v30 = vmul.f32 %v664_v35, %v359_v7 }
 0x147   :  { %v409_v38 = vsel %vm407_vm13, %v408_v36, %v406_v37 }
 0x148   :  { %479 = vst [vmem:[%s1060_s4 + $0x30] sm:$0xff] %v409_v38  ;;  %v462_v41 = vsel %vm461_vm14, %v359_v7, %v460_v30 }
 0x149   :  { %v465_v42 = vsel %vm463_vm15, %v464_v39, %v462_v41 }
 0x14a   :  { %487 = vst [vmem:[%s1060_s4 + $0x70] sm:$0xff] %v465_v42 }

// kernel: _range_loss.4
= control target key start
LH: loop header
LB: loop body
LE: loop exit
PB: predicated region body
PF: predicated region fallthrough
CT: control target
= control target key end

     0   :  { %v146_v1 = vmov 0.0   ;;  %vm147_vm0 = vmmov 0   ;;  %v148_v4 = vmov 0   ;;  %vm48_vm1 = vcmask 64512   ;;  %s181_s0 = inlined_call_operand.vmem [shape: f32[8,3], index: 0, kind: input, shape index: {}]   ;;  %s182_s1 = inlined_call_operand.vmem [shape: f32[8,128], index: 1, kind: input, shape index: {}]   ;;  %s183_s2 = inlined_call_operand.vmem [shape: f32[3,1], index: 2, kind: input, shape index: {}]   ;;  %s184_s3 = inlined_call_operand.vmem [shape: f32[3,128], index: 3, kind: output, shape index: {}]  }
   0x1   :  { %v14_v0 = vld [vmem:[%s181_s0] sm:$0xff]  ;;  %137 = vmatprep.subr.mxu0 %v146_v1  ;;  %139 = vmatprep.mubr.msk.f32.mxu0 %vm147_vm0, %v146_v1 }
   0x2   :  { %v15_v2 = vld [vmem:[%s182_s1] sm:$0xff]  ;;  %16 = vxpose.xlu0.b32.start.end [1/1] (short) (narrow) %v14_v0, 8 }
   0x3   :  { %138 = vmatpush3.msra.mxu0 %v15_v2  ;;  %v122_v3 = vld [vmem:[%s183_s2] sm:$0x7] }
  0x2b   :  { %145 = vset.pattern.permute.xlu0 %v148_v4 }
  0x2c   :  { %125 = vperm.xlu0 %145, %v122_v3  }
  0x82   :  { %v32_v5 = vpop.trf.xlu0 }
  0x83   :  { %140 = vmatmul.mubr.msk.f32.vlgmr.msra.gmra.mrb[0].mxu0 %vm48_vm1, %v32_v5 }
  0xab   :  { %v126_v6 = vpop.permute.xlu0 %125 }
 0x156   :  { %v118_v7 = vpop.f32.mrb[0].mxu0 }
 0x157   :  { %v128_v8 = vmul.f32 %v126_v6, %v118_v7  ;;  %v141_v9 = vpop.f32.mrb[1].mxu0 }
 0x159   :  { %129 = vst [vmem:[%s184_s3] sm:$0x7] %v128_v8 }

</bundles_post_ra>
